<compile_context>
chip_gen: v6e
topology: v6e:2x2x1
jax: 0.10.0
libtpu: 0.0.40
codegen_flags: <defaults>
</compile_context>

<pallas_src>
import jax
import jax.numpy as jnp
from jax.experimental import pallas as pl
from jax.experimental.pallas import tpu as pltpu


def _round_up(x, m):
    return ((x + m - 1) // m) * m


def _make_fcn_kernel(activation):
    def kernel(x_ref, w_ref, b_ref, o_ref, acc_ref):
        k = pl.program_id(2)

        @pl.when(k == 0)
        def _init():
            acc_ref[...] = jnp.zeros_like(acc_ref)

        # bf16 x bf16 -> f32 accumulate on the MXU.
        acc_ref[...] += jnp.dot(x_ref[...], w_ref[...],
                                preferred_element_type=jnp.float32)

        @pl.when(k == pl.num_programs(2) - 1)
        def _finalize():
            y = acc_ref[...] + b_ref[...]          # f32 bias add (VPU)
            if activation == "tanh":
                y = jnp.tanh(y)                    # EUP transcendental
            else:                                  # relu
                y = jnp.maximum(y, 0.0)
            o_ref[...] = y.astype(o_ref.dtype)     # lane-dense, unmasked store

    return kernel


def fcn_forward(x, weight_t, bias, activation="tanh"):
    """FCN forward: act(reshape(x, (B, -1)) @ weight_t + bias).

    weight_t: (cin, cout)  -- PyTorch weight (cout, cin) pre-transposed.
    bias:     (cout,)
    """
    if activation not in ("tanh", "relu"):
        raise ValueError(f"unsupported activation: {activation}")

    B = x.shape[0]
    x2d = x.reshape(B, -1)                 # same as torch .reshape(B, -1)
    cin, cout = weight_t.shape
    assert x2d.shape[1] == cin
    out_dtype = x2d.dtype

    # MXU-native bf16 inputs; accumulation / bias / activation remain f32.
    xb = x2d.astype(jnp.bfloat16)
    wb = weight_t.astype(jnp.bfloat16)
    b2d = bias.astype(jnp.float32).reshape(1, cout)

    # Tile sizes: lane-dense (multiple of 128) N tiles, bf16-friendly sublane
    # multiples for M/K, sized well under v7x's 32 MiB default scoped VMEM.
    tm = 256 if B >= 256 else _round_up(B, 16)
    tn = 512 if cout >= 512 else _round_up(cout, 128)
    tk = 512 if cin >= 512 else _round_up(cin, 128)

    Mp = _round_up(B, tm)
    Kp = _round_up(cin, tk)
    Np = _round_up(cout, tn)

    # Zero-pad to tile multiples: padded K columns contribute 0 to the matmul;
    # padded M rows / N columns are sliced off after the call.
    xb = jnp.pad(xb, ((0, Mp - B), (0, Kp - cin)))
    wb = jnp.pad(wb, ((0, Kp - cin), (0, Np - cout)))
    b2d = jnp.pad(b2d, ((0, 0), (0, Np - cout)))

    grid = (Mp // tm, Np // tn, Kp // tk)
    kernel = _make_fcn_kernel(activation)

    cost = pl.CostEstimate(
        flops=2 * Mp * Np * Kp,
        transcendentals=(Mp * Np if activation == "tanh" else 0),
        bytes_accessed=Mp * Kp * 2 + Kp * Np * 2 + Np * 4 + Mp * Np * 4,
    )

    out_p = pl.pallas_call(
        kernel,
        out_shape=jax.ShapeDtypeStruct((Mp, Np), out_dtype),
        grid_spec=pltpu.PrefetchScalarGridSpec(
            num_scalar_prefetch=0,
            grid=grid,
            in_specs=[
                pl.BlockSpec((tm, tk), lambda i, j, k: (i, k)),   # x tile
                pl.BlockSpec((tk, tn), lambda i, j, k: (k, j)),   # W^T tile
                pl.BlockSpec((1, tn), lambda i, j, k: (0, j)),    # bias tile (f32)
            ],
            out_specs=pl.BlockSpec((tm, tn), lambda i, j, k: (i, j)),
            scratch_shapes=[pltpu.VMEM((tm, tn), jnp.float32)],   # f32 accumulator
        ),
        compiler_params=pltpu.CompilerParams(
            dimension_semantics=("parallel", "parallel", "arbitrary")),
        cost_estimate=cost,
    )(xb, wb, b2d)

    return out_p[:B, :cout]


if __name__ == "__main__":
    # Module config: cin inferred from flattened NCHW input, small cout.
    B, C, H, W = 2, 4, 16, 16
    cin = C * H * W                  # 1024
    cout = 32

    key = jax.random.PRNGKey(0)
    kx, kw, kb = jax.random.split(key, 3)

    x = jax.random.normal(kx, (B, C, H, W), dtype=jnp.float32)

    # PyTorch-style uniform(-1/sqrt(cin), 1/sqrt(cin)) init.
    bound = 1.0 / jnp.sqrt(jnp.float32(cin))
    weight_t = jax.random.uniform(kw, (cin, cout), jnp.float32, -bound, bound)
    bias = jax.random.uniform(kb, (cout,), jnp.float32, -bound, bound)

    out = fcn_forward(x, weight_t, bias, activation="tanh")
    out = jax.block_until_ready(out)
    assert out.shape == (B, cout)

    # Reference at matched precision (bf16 matmul inputs, f32 accumulate).
    x_bf = x.reshape(B, -1).astype(jnp.bfloat16).astype(jnp.float32)
    w_bf = weight_t.astype(jnp.bfloat16).astype(jnp.float32)
    ref = jnp.tanh(x_bf @ w_bf + bias[None, :])
    assert jnp.allclose(out, ref, atol=2e-3, rtol=2e-3), float(
        jnp.max(jnp.abs(out - ref)))

    # Sanity check against the full-f32 reference with a looser tolerance.
    ref_f32 = jnp.tanh(x.reshape(B, -1) @ weight_t + bias[None, :])
    assert jnp.allclose(out, ref_f32, atol=3e-2, rtol=3e-2)

    print("KERNEL_OK")
</pallas_src>

<mosaic_0001>
module attributes {stable_mosaic.version = 11 : i64} {
  func.func @kernel(%arg0: i32, %arg1: i32, %arg2: i32, %arg3: memref<16x512xbf16, #tpu.memory_space<vmem>>, %arg4: memref<512x128xbf16, #tpu.memory_space<vmem>>, %arg5: memref<1x128xf32, #tpu.memory_space<vmem>>, %arg6: memref<16x128xf32, #tpu.memory_space<vmem>>, %arg7: memref<16x128xf32, #tpu.memory_space<vmem>>) attributes {dimension_semantics = [#tpu.dimension_semantics<parallel>, #tpu.dimension_semantics<parallel>, #tpu.dimension_semantics<arbitrary>], iteration_bounds = array<i64: 1, 1, 2>, scalar_prefetch = 0 : i64, scratch_operands = 1 : i64, tpu.core_type = #tpu.core_type<tc>, window_params = [{transform_indices = @transform_0, window_bounds = array<i64: 16, 512>}, {transform_indices = @transform_1, window_bounds = array<i64: 512, 128>}, {transform_indices = @transform_2, window_bounds = array<i64: 1, 128>}, {transform_indices = @transform_3, window_bounds = array<i64: 16, 128>}]} {
    %c0_i32 = arith.constant 0 : i32
    %0 = arith.cmpi eq, %arg2, %c0_i32 : i32
    %1 = arith.extui %0 : i1 to i32
    %c0_i32_0 = arith.constant 0 : i32
    %2 = arith.cmpi ne, %1, %c0_i32_0 : i32
    scf.if %2 {
      %cst_9 = arith.constant 0.000000e+00 : f32
      %12 = vector.broadcast %cst_9 : f32 to vector<16x128xf32>
      %c0_10 = arith.constant 0 : index
      %c0_11 = arith.constant 0 : index
      %13 = vector.load %arg7[%c0_10, %c0_11] : memref<16x128xf32, #tpu.memory_space<vmem>>, vector<16x128xf32>
      tpu.vector_store %arg7[%c0_10, %c0_11], %12 {strides = array<i32>} : memref<16x128xf32, #tpu.memory_space<vmem>>, vector<16x128xf32>,
    } else {
    }
    %c0 = arith.constant 0 : index
    %c0_1 = arith.constant 0 : index
    %3 = vector.load %arg7[%c0, %c0_1] : memref<16x128xf32, #tpu.memory_space<vmem>>, vector<16x128xf32>
    %c0_2 = arith.constant 0 : index
    %c0_3 = arith.constant 0 : index
    %4 = vector.load %arg3[%c0_2, %c0_3] : memref<16x512xbf16, #tpu.memory_space<vmem>>, vector<16x512xbf16>
    %c0_4 = arith.constant 0 : index
    %c0_5 = arith.constant 0 : index
    %5 = vector.load %arg4[%c0_4, %c0_5] : memref<512x128xbf16, #tpu.memory_space<vmem>>, vector<512x128xbf16>
    %cst = arith.constant dense<0.000000e+00> : vector<16x128xf32>
    %6 = tpu.matmul %4, %5, %cst {dimension_numbers = #tpu.dot_dimension_numbers<[1], [0], [0], [1], [0, 0, 1, 1], [], []>} : vector<16x512xbf16>, vector<512x128xbf16>, vector<16x128xf32> -> vector<16x128xf32>
    %7 = arith.addf %3, %6 : vector<16x128xf32>
    %c0_6 = arith.constant 0 : index
    %c0_7 = arith.constant 0 : index
    %8 = vector.load %arg7[%c0_6, %c0_7] : memref<16x128xf32, #tpu.memory_space<vmem>>, vector<16x128xf32>
    tpu.vector_store %arg7[%c0_6, %c0_7], %7 {strides = array<i32>} : memref<16x128xf32, #tpu.memory_space<vmem>>, vector<16x128xf32>,
    %c1_i32 = arith.constant 1 : i32
    %9 = arith.cmpi eq, %arg2, %c1_i32 : i32
    %10 = arith.extui %9 : i1 to i32
    %c0_i32_8 = arith.constant 0 : i32
    %11 = arith.cmpi ne, %10, %c0_i32_8 : i32
    scf.if %11 {
      %c0_9 = arith.constant 0 : index
      %c0_10 = arith.constant 0 : index
      %12 = vector.load %arg7[%c0_9, %c0_10] : memref<16x128xf32, #tpu.memory_space<vmem>>, vector<16x128xf32>
      %c0_11 = arith.constant 0 : index
      %c0_12 = arith.constant 0 : index
      %13 = vector.load %arg5[%c0_11, %c0_12] : memref<1x128xf32, #tpu.memory_space<vmem>>, vector<1x128xf32>
      %14 = vector.broadcast %13 : vector<1x128xf32> to vector<16x128xf32>
      %15 = arith.addf %12, %14 : vector<16x128xf32>
      %16 = math.tanh %15 : vector<16x128xf32>
      %c0_13 = arith.constant 0 : index
      %c0_14 = arith.constant 0 : index
      %17 = vector.load %arg6[%c0_13, %c0_14] : memref<16x128xf32, #tpu.memory_space<vmem>>, vector<16x128xf32>
      tpu.vector_store %arg6[%c0_13, %c0_14], %16 {strides = array<i32>} : memref<16x128xf32, #tpu.memory_space<vmem>>, vector<16x128xf32>,
    } else {
    }
    return
  }
  func.func @transform_0(%arg0: i32, %arg1: i32, %arg2: i32) -> (i32, i32) {
    %c0_i32 = arith.constant 0 : i32
    return %arg0, %arg2 : i32, i32
  }
  func.func @transform_1(%arg0: i32, %arg1: i32, %arg2: i32) -> (i32, i32) {
    %c0_i32 = arith.constant 0 : i32
    return %arg2, %arg1 : i32, i32
  }
  func.func @transform_2(%arg0: i32, %arg1: i32, %arg2: i32) -> (i32, i32) {
    %c0_i32 = arith.constant 0 : i32
    %c0_i32_0 = arith.constant 0 : i32
    return %c0_i32, %arg1 : i32, i32
  }
  func.func @transform_3(%arg0: i32, %arg1: i32, %arg2: i32) -> (i32, i32) {
    %c0_i32 = arith.constant 0 : i32
    return %arg0, %arg1 : i32, i32
  }
}

</mosaic_0001>

<bundles_post_ra>
// kernel: tpu_custom_call.1
= control target key start
LH: loop header
LB: loop body
LE: loop exit
PB: predicated region body
PF: predicated region fallthrough
CT: control target
= control target key end

     0   :  { %8 = vsyncpa [#allocation4], 0  ;;  %s1357_s0 = inlined_call_operand.hbm [shape: bf16[16,1024], index: 0, kind: input, shape index: {}]   ;;  %s1358_s1 = inlined_call_operand.hbm [shape: bf16[1024,128], index: 1, kind: input, shape index: {}]   ;;  %s1359_s2 = inlined_call_operand.vmem [shape: f32[1,128], index: 2, kind: input, shape index: {}]   ;;  %s1360_s3 = inlined_call_operand.hbm [shape: f32[16,128], index: 3, kind: output, shape index: {}]  }
   0x1   :  { %10 = vsyncpa [#allocation4 + $0x1], 0 }
   0x2   :  { %11 = vsyncpa [#allocation7], 0 }
   0x3   :  { %13 = vsyncpa [#allocation7 + $0x1], 0 }
   0x4   :  { %14 = vsyncpa [#allocation5], 0  ;;  %s1172_s12 = smov 0   ;;  %s1174_s13 = smov 0  }
   0x5   :  { %s1176_s14 = smov 0   ;;  %s1178_s15 = smov 0  }
   0x6   :  { %s1180_s16 = smov 0   ;;  %s1182_s17 = smov 0  }
   0x7 LB: > { %s782_s18 = sadd.s32 4294967295, %s1139_s17   ;;  %s32_s19 = sadd.s32 1, %s1135_s16  ;;  %s1139_s17 = sphi %s1182_s17, %s20_s17   ;;  %s1135_s16 = sphi %s1180_s16, %s1370_s16   ;;  %s1131_s15 = sphi %s1178_s15, %s1369_s15   ;;  %s1127_s14 = sphi %s1176_s14, %s1368_s14   ;;  %s1123_s13 = sphi %s1174_s13, %s1367_s13   ;;  %s1119_s12 = sphi %s1172_s12, %s1366_s12  }
   0x8   : > { %p33_p0 = scmp.ge.s32.totalorder %s32_s19, 2  ;;  %s48_s20 = sadd.s32 1, %s1127_s14 }
   0x9   : > { %p55_p1 = scmp.ne.s32.totalorder %s1127_s14, %s1123_s13  ;;  %p56_p2 = scmp.eq.s32.totalorder %s1139_s17, 0 }
   0xa   : > { %s1372_s19 = smov (%p33_p0, %s32_s19), 0  ;;  %p61_p4 = scmp.ne.s32.totalorder %s1123_s13, %s1119_s12 }
   0xb   : > { %p1208_p3 = por %p56_p2, %p55_p1  ;;  %s44_s22 = ssub.s32 %s1135_s16, %s1372_s19 }
   0xc   : > { %p62_p5 = scmp.eq.s32.totalorder %s782_s18, 0  ;;  %p46_p6 = scmp.eq.s32.totalorder %s44_s22, 0 }
   0xd   : > { %p899_p8 = scmp.lt.s32.totalorder %s1139_s17, 2  ;;  %s1226_s25 = sand.u32 1, %s1127_s14  }
   0xe   : > { %p1217_p7 = por %p62_p5, %p61_p4  ;;  %s838_s26 = sshll.u32 %s1135_s16, 8 }
   0xf   : > { %s1223_s24 = scalar_select %p46_p6, %s1127_s14, %s48_s20  }
  0x10   : > { %s786_s27 = sshll.u32 %s1226_s25, 5  ;;  %s186_s30 = scalar_lea.hbm %s1357_s0, %s838_s26 }
  0x11   : > { %s177_s4 = scalar_lea.vmem [#allocation3], %s786_s27  ;;  %p1235_p9 = pnand %p899_p8, %p1208_p3 }
  0x12   : > { %s187_s5 = sshll.u32 %s177_s4, 4  ;;  %p792_p10 = scmp.ge.s32.totalorder %s1139_s17, 1  ;;  %s188_s5 = int_to_ptr.vmem [resolvable:$true] %s187_s5 }
  0x13   : > { %s174_s7 = scalar_lea.sflag [#allocation4], %s1226_s25  ;;  %p1003_p11 = pneg %p1235_p9 }
  0x14   : > { %s1014_s8 = scalar_lea.vmem %s188_s5, 512  ;;  %s1141_s9 = smov [#allocation3]  }
  0x15   : > { %p1015_p12 = scmp.ne.s32.totalorder %s188_s5, %s1014_s8  ;;  %s1019_s10 = sshll.u32 %s1141_s9, 4  ;;  %s1020_s10 = int_to_ptr.vmem [resolvable:$false] %s1019_s10 }
  0x16   : > { %s1021_s11 = scalar_lea.vmem %s1020_s10, 1024  ;;  %p1022_p1 = scmp.lt.s32.totalorder %s188_s5, %s1020_s10 }
  0x17   : > { %p1017_p13 = pnand %p1015_p12, %p1003_p11  ;;  %p1023_p2 = scmp.lt.s32.totalorder %s1021_s11, %s1014_s8 }
  0x19   : > { %p1018_p0 = pneg %p1017_p13  ;;  %p1024_p3 = por %p1023_p2, %p1022_p1 }
  0x1b   : > { %p1025_p4 = pnand %p1024_p3, %p1018_p0 }
  0x1d   : > { %1028 = shalt.err (!%p1025_p4)
}
  0x1e   : > { %s1142_s12 = smov 512   ;;  %s1143_s20 = smov 256  }
  0x1f   : > { %s1144_s21 = smov 16   ;;  %p217_p5 = scmp.lt.s32.totalorder %s1139_s17, 3 }
  0x20   : > { %895 = dma.hbm_to_vmem [thread:$0]  (!%p1235_p9), %s186_s30, 512, %s188_s5, %s174_s7, %s1142_s12, %s1143_s20, %s1144_s21  }
  0x21   : > { %s789_s22 = sshll.u32 %s1226_s25, 8  ;;  %s839_s26 = sshll.u32 %s1135_s16, 12 }
  0x22   : > { %p1253_p6 = pnand %p792_p10, %p217_p5  ;;  %s208_s4 = scalar_lea.hbm %s1358_s1, %s839_s26 }
  0x23   : > { %s201_s8 = scalar_lea.vmem [#allocation6], %s789_s22  ;;  %s198_s10 = scalar_lea.sflag [#allocation7], %s1226_s25 }
  0x24   : > { %s209_s9 = sshll.u32 %s201_s8, 4  ;;  %s1145_s30 = smov [#allocation6]   ;;  %s210_s9 = int_to_ptr.vmem [resolvable:$true] %s209_s9 }
  0x25   : > { %s1042_s11 = scalar_lea.vmem %s210_s9, 4096  ;;  %s1047_s5 = sshll.u32 %s1145_s30, 4  ;;  %s1048_s5 = int_to_ptr.vmem [resolvable:$false] %s1047_s5 }
  0x26   : > { %p1043_p8 = scmp.ne.s32.totalorder %s210_s9, %s1042_s11  ;;  %s1049_s7 = scalar_lea.vmem %s1048_s5, 8192 }
  0x27   : > { %p1050_p10 = scmp.lt.s32.totalorder %s210_s9, %s1048_s5  ;;  %p1051_p0 = scmp.lt.s32.totalorder %s1049_s7, %s1042_s11 }
  0x28   : > { %p1045_p12 = pnand %p1043_p8, %p1003_p11 }
  0x29   : > { %p1052_p1 = por %p1051_p0, %p1050_p10 }
  0x2a   : > { %p1046_p13 = pneg %p1045_p12 }
  0x2c   : > { %p1053_p2 = pnand %p1052_p1, %p1046_p13 }
  0x2e   : > { %1056 = shalt.err (!%p1053_p2)
}
  0x2f   : > { %s1146_s12 = smov 64   ;;  %s1147_s20 = smov 4  }
  0x30   : > { %898 = dma.hbm_to_vmem [thread:$0]  (!%p1235_p9), %s208_s4, 4096, %s210_s9, %s198_s10, %s1146_s12, %s1146_s12, %s1147_s20  }
  0x31   : > { %221 = sbr.rel (%p1253_p6) target bundleno = 348 (0x15c), region = 32  ;;  %s223_s25 = sand.u32 (!%p1253_p6), 1, %s1123_s13  }
  0x32   : > { %s793_s21 = sshll.u32 (!%p1253_p6), %s223_s25, 5  ;;  %s224_s22 = scalar_lea.sflag (!%p1253_p6), [#allocation4], %s223_s25 }
  0x33   : > { %s1269_s26 = scalar_lea.vmem (!%p1253_p6), [#allocation3], %s793_s21 }
  0x36   : > { %1106 = dma.done.wait (%p1217_p7), %s224_s22, 512  }
  0x37   : > { %1108 = vsyncadd (%p1217_p7), %s224_s22, 4294966784  ;;  %s794_s28 = sshll.u32 %s223_s25, 8  ;;  %s233_s29 = scalar_lea.sflag [#allocation7], %s223_s25 }
  0x38   : > { %s1275_s6 = scalar_lea.vmem [#allocation6], %s794_s28 }
  0x39   : > { %1110 = dma.done.wait (%p1217_p7), %s233_s29, 4096  }
  0x3a   : > { %1112 = vsyncadd (%p1217_p7), %s233_s29, 4294963200  ;;  %p795_p9 = scmp.ne.s32.totalorder %s1131_s15, 0 }
  0x3c   : > { %273 = sbr.rel (%p795_p9) target bundleno = 67 (0x43), region = 44 }
  0x41   : > { %v1148_v0 = vmov 0.0  }
  0x42   : > { %274 = vst [vmem:[#allocation2] sm:$0xff] %v1148_v0  ;;  %275 = vst [vmem:[#allocation2 + $0x8] sm:$0xff] %v1148_v0 }
  0x43 PF: > { %v959_v1 = vld [vmem:[%s1275_s6 + $0x78] sm:$0xff]   ;;  %v963_v5 = vld [vmem:[%s1275_s6 + $0x70] sm:$0xff]   ;;  %v967_v9 = vld [vmem:[%s1275_s6 + $0x68] sm:$0xff]   ;;  %p832_p7 = scmp.ne.s32.totalorder %s1131_s15, 1 }
  0x44   : > { %v960_v2 = vld [vmem:[%s1275_s6 + $0xf8] sm:$0xff]   ;;  %840 = vmatprep.subr.bf16.mxu0 %v959_v1  ;;  %v964_v6 = vld [vmem:[%s1275_s6 + $0xf0] sm:$0xff]   ;;  %v968_v10 = vld [vmem:[%s1275_s6 + $0xe8] sm:$0xff]  }
  0x45   : > { %v961_v3 = vld [vmem:[%s1275_s6 + $0x38] sm:$0xff]   ;;  %862 = vmatprep.subr.bf16.mxu1 %v960_v2  ;;  %v965_v7 = vld [vmem:[%s1275_s6 + $0x30] sm:$0xff]   ;;  %v969_v11 = vld [vmem:[%s1275_s6 + $0x28] sm:$0xff]  }
  0x46   : > { %v962_v4 = vld [vmem:[%s1275_s6 + $0xb8] sm:$0xff]   ;;  %841 = vmatpush3.bf16.msra.mxu0 %v961_v3  ;;  %v966_v8 = vld [vmem:[%s1275_s6 + $0xb0] sm:$0xff]   ;;  %v970_v12 = vld [vmem:[%s1275_s6 + $0xa8] sm:$0xff]  }
  0x47   : > { %863 = vmatpush3.bf16.msra.mxu1 %v962_v4  ;;  %842 = vmatprep.subr.bf16.mxu0 %v963_v5  ;;  %v971_v13 = vld [vmem:[%s1275_s6 + $0x60] sm:$0xff]   ;;  %v975_v17 = vld [vmem:[%s1275_s6 + $0x58] sm:$0xff]   ;;  %v979_v21 = vld [vmem:[%s1275_s6 + $0x50] sm:$0xff]  }
  0x48   : > { %864 = vmatprep.subr.bf16.mxu1 %v964_v6  ;;  %v972_v14 = vld [vmem:[%s1275_s6 + $0xe0] sm:$0xff]   ;;  %v976_v18 = vld [vmem:[%s1275_s6 + $0xd8] sm:$0xff]   ;;  %v980_v22 = vld [vmem:[%s1275_s6 + $0xd0] sm:$0xff]  }
  0x49   : > { %v973_v15 = vld [vmem:[%s1275_s6 + $0x20] sm:$0xff]   ;;  %v977_v19 = vld [vmem:[%s1275_s6 + $0x18] sm:$0xff]   ;;  %v981_v23 = vld [vmem:[%s1275_s6 + $0x10] sm:$0xff]  }
  0x4a   : > { %843 = vmatpush3.bf16.msra.mxu0 %v965_v7  ;;  %v974_v16 = vld [vmem:[%s1275_s6 + $0xa0] sm:$0xff]   ;;  %v978_v20 = vld [vmem:[%s1275_s6 + $0x98] sm:$0xff]   ;;  %v982_v24 = vld [vmem:[%s1275_s6 + $0x90] sm:$0xff]  }
  0x4b   : > { %865 = vmatpush3.bf16.msra.mxu1 %v966_v8  ;;  %844 = vmatprep.subr.bf16.mxu0 %v967_v9  ;;  %v983_v25 = vld [vmem:[%s1275_s6 + $0x48] sm:$0xff]   ;;  %v987_v29 = vld [vmem:[%s1275_s6 + $0x40] sm:$0xff]   ;;  %v276_v44 = vld [vmem:[#allocation2] sm:$0xff] }
  0x4c   : > { %866 = vmatprep.subr.bf16.mxu1 %v968_v10  ;;  %v984_v26 = vld [vmem:[%s1275_s6 + $0xc8] sm:$0xff]   ;;  %v988_v30 = vld [vmem:[%s1275_s6 + $0xc0] sm:$0xff]   ;;  %v277_v52 = vld [vmem:[#allocation2 + $0x8] sm:$0xff] }
  0x4d   : > { %v985_v27 = vld [vmem:[%s1275_s6 + $0x8] sm:$0xff]   ;;  %v989_v31 = vld [vmem:[%s1275_s6] sm:$0xff]  }
  0x4e   : > { %845 = vmatpush3.bf16.msra.mxu0 %v969_v11  ;;  %v986_v28 = vld [vmem:[%s1275_s6 + $0x88] sm:$0xff]   ;;  %v990_v32 = vld [vmem:[%s1275_s6 + $0x80] sm:$0xff]  }
  0x4f   : > { %867 = vmatpush3.bf16.msra.mxu1 %v970_v12  ;;  %846 = vmatprep.subr.bf16.mxu0 %v971_v13  ;;  %v991_v33 = vld [vmem:[%s1269_s26] ss:$16 sps:$4 sm:$0xff]   ;;  %v993_v34 = vld [vmem:[%s1269_s26 + $0x4] ss:$16 sps:$4 sm:$0xff]   ;;  %v994_v35 = vld [vmem:[%s1269_s26 + $0x8] ss:$16 sps:$4 sm:$0xff]  }
  0x50   : > { %868 = vmatprep.subr.bf16.mxu1 %v972_v14  ;;  %v996_v36 = vld [vmem:[%s1269_s26 + $0xc] ss:$16 sps:$4 sm:$0xff]   ;;  %590 = vmatprep.mubr.bf16.mxu0 %v993_v34 }
  0x51   : > { %631 = vmatprep.mubr.bf16.mxu1 %v996_v36 }
  0x52   : > { %847 = vmatpush3.bf16.msra.mxu0 %v973_v15 }
  0x53   : > { %869 = vmatpush3.bf16.msra.mxu1 %v974_v16  ;;  %848 = vmatprep.subr.bf16.mxu0 %v975_v17 }
  0x54   : > { %870 = vmatprep.subr.bf16.mxu1 %v976_v18 }
  0x56   : > { %849 = vmatpush3.bf16.msra.mxu0 %v977_v19 }
  0x57   : > { %871 = vmatpush3.bf16.msra.mxu1 %v978_v20  ;;  %850 = vmatprep.subr.bf16.mxu0 %v979_v21 }
  0x58   : > { %872 = vmatprep.subr.bf16.mxu1 %v980_v22 }
  0x5a   : > { %851 = vmatpush3.bf16.msra.mxu0 %v981_v23 }
  0x5b   : > { %873 = vmatpush3.bf16.msra.mxu1 %v982_v24  ;;  %852 = vmatprep.subr.bf16.mxu0 %v983_v25 }
  0x5c   : > { %874 = vmatprep.subr.bf16.mxu1 %v984_v26 }
  0x5e   : > { %853 = vmatpush3.bf16.msra.mxu0 %v985_v27 }
  0x5f   : > { %875 = vmatpush3.bf16.msra.mxu1 %v986_v28  ;;  %854 = vmatprep.subr.bf16.mxu0 %v987_v29 }
  0x60   : > { %876 = vmatprep.subr.bf16.mxu1 %v988_v30 }
  0x62   : > { %855 = vmatpush3.bf16.msra.mxu0 %v989_v31 }
  0x63   : > { %877 = vmatpush3.bf16.msra.mxu1 %v990_v32 }
  0x65   : > { %591 = vmatmul.mubr.bf16.vlgmr.msra.gmra.mxu0 %v991_v33 }
  0x66   : > { %632 = vmatmul.mubr.bf16.vlgmr.msra.gmra.mxu1 %v994_v35 }
 0x125   : > { %v856_v37 = vpop.f32.mrf.mxu0 }
 0x126   : > { %v878_v38 = vpop.f32.mrf.mxu1 }
 0x127   : > { %v857_v39 = vpop.f32.mrf.mxu0 }
 0x128   : > { %v858_v40 = vadd.f32 %v857_v39, %v856_v37  ;;  %v879_v41 = vpop.f32.mrf.mxu1 }
 0x129   : > { %v880_v42 = vadd.f32 %v879_v41, %v878_v38  ;;  %v859_v43 = vpop.f32.mrf.mxu0 }
 0x12a   : > { %v881_v45 = vpop.f32.mrf.mxu1 }
 0x12b   : > { %v634_v46 = vadd.f32 %v880_v42, %v858_v40  ;;  %v860_v47 = vpop.f32.mrf.mxu0 }
 0x12c   : > { %v861_v48 = vadd.f32 %v860_v47, %v859_v43  ;;  %v882_v49 = vpop.f32.mrf.mxu1 }
 0x12d   : > { %v640_v50 = vadd.f32 %v634_v46, %v276_v44  ;;  %v883_v51 = vadd.f32 %v882_v49, %v881_v45 }
 0x12f   : > { %642 = vst [vmem:[#allocation2] sm:$0xff] %v640_v50  ;;  %v637_v53 = vadd.f32 %v883_v51, %v861_v48  ;;  %647 = sbr.rel (%p832_p7) target bundleno = 332 (0x14c), region = 48 }
 0x131   : > { %v641_v54 = vadd.f32 %v637_v53, %v277_v52 }
 0x133   : > { %643 = vst [vmem:[#allocation2 + $0x8] sm:$0xff] %v641_v54 }
 0x134   : > { %v833_v56 = vld [vmem:[%s1359_s2] ss:$0 sm:$0xff] }
 0x136   : > { %v648_v55 = vld [vmem:[#allocation2] sm:$0xff] }
 0x137   : > { %v657_v58 = vadd.f32 %v833_v56, %v648_v55 }
 0x139   : > { %997 = vtanh.f32 %v657_v58 }
 0x13a   : > { %v649_v57 = vld [vmem:[#allocation2 + $0x8] sm:$0xff] }
 0x13b   : > { %v658_v59 = vadd.f32 %v833_v56, %v649_v57 }
 0x13d   : > { %999 = vtanh.f32 %v658_v59 }
 0x146   : > { %v998_v60 = vpop.eup %997 }
 0x147   : > { %661 = vst [vmem:[#allocation8] sm:$0xff] %v998_v60 }
 0x14a   : > { %v1000_v61 = vpop.eup %999 }
 0x14b   : > { %662 = vst [vmem:[#allocation8 + $0x8] sm:$0xff] %v1000_v61 }
 0x14c PF: > { %p1324_p11 = scmp.eq.s32.totalorder %s782_s18, 1  ;;  %s1149_s4 = smov [#allocation8]  }
 0x14d   : > { %s673_s8 = sshll.u32 %s1149_s4, 4  ;;  %s674_s8 = int_to_ptr.vmem [resolvable:$true] %s673_s8 }
 0x14e   : > { %s1057_s9 = scalar_lea.vmem %s674_s8, 256  ;;  %p1064_p6 = scmp.lt.s32.totalorder %s674_s8, %s674_s8 }
 0x14f   : > { %p1058_p3 = scmp.ne.s32.totalorder %s674_s8, %s1057_s9  ;;  %p1065_p8 = scmp.lt.s32.totalorder %s1057_s9, %s1057_s9 }
 0x151   : > { %p1059_p4 = pnand %p1058_p3, %p1324_p11  ;;  %p1066_p12 = por %p1065_p8, %p1064_p6 }
 0x153   : > { %p1060_p5 = pneg %p1059_p4 }
 0x155   : > { %p1067_p13 = pnand %p1066_p12, %p1060_p5 }
 0x157   : > { %1070 = shalt.err (!%p1067_p13)
}
 0x158   : > { %s1150_s10 = smov 128   ;;  %s1151_s18 = smov 8  }
 0x159   : > { %889 = dma.vmem_to_hbm [thread:$0]  (%p1324_p11), %s674_s8, 256, %s1360_s3, [#allocation5], %s1150_s10, %s1150_s10, %s1151_s18  }
 0x15a   : > { %1114 = dma.done.wait (%p1324_p11), [#allocation5], 256  }
 0x15b   : > { %1116 = vsyncadd (%p1324_p11), [#allocation5], 4294967040 }
 0x15c PF: > { %s20_s17 = sadd.s32 1, %s1139_s17   ;;  %s1366_s12 = smov %s1123_s13 }
 0x15d   : > { %p17_p10 = scmp.ge.s32.totalorder %s20_s17, 4   ;;  %s1367_s13 = smov %s1127_s14 }
 0x15e   : > { %s1368_s14 = smov %s1223_s24  ;;  %s1369_s15 = smov %s1135_s16 }
 0x15f   : > { %s1370_s16 = smov %s1372_s19  ;;  %19 = sbr.rel (!%p17_p10) target bundleno = 7 (0x7), region = 94 }
 0x164   :  { %689 = vsyncpa [#allocation4], 1 }
 0x165   :  { %691 = vsyncpa [#allocation4 + $0x1], 1 }
 0x166   :  { %692 = vsyncpa [#allocation7], 1 }
 0x167   :  { %694 = vsyncpa [#allocation7 + $0x1], 1 }
 0x168   :  { %695 = vsyncpa [#allocation5], 1 }
 0x169   :  { %697 = vsyncpa [#allocation5 + $0x1], 1 }

</bundles_post_ra>
